<compile_context>
chip_gen: v6e
topology: v6e:2x2x1
jax: 0.10.0
libtpu: 0.0.40
codegen_flags: <defaults>
</compile_context>

<pallas_src>
import functools
import math

import jax
import jax.numpy as jnp
from jax.experimental import pallas as pl
from jax.experimental.pallas import tpu as pltpu

GAMMA = 0.5
ALPHA = 0.25
EPS = 1e-07

LANES = 128
SUBLANES = 8
BLOCK_ROWS_MAX = 2048   # 2048*128*4B = 1 MiB per f32 input block


def _round_up(x, m):
    return (x + m - 1) // m * m


def _num_tensorcores():
    """Best-effort TensorCore count of the local chip (for megacore sharding)."""
    try:
        info = pltpu.get_tpu_info()
        for name in ("num_cores", "core_count", "num_tensorcores",
                     "tensorcore_count", "num_tensor_cores", "cores_per_chip"):
            val = getattr(info, name, None)
            if val:
                return max(1, min(int(val), 4))
    except Exception:
        pass
    return 2  # harmless on 1-TC chips: just one extra (8,128) partial row


def _focal_loss_kernel(x_ref, t_ref, partial_ref, *, gamma, alpha, xclip,
                       inner, n_blocks, block_rows, valid_last, exact_grid):
    i = pl.program_id(1)

    # Output block (one (8,128) f32 partial per outer index) is resident across
    # the inner reduction axis: zero it once.
    @pl.when(i == 0)
    def _init():
        partial_ref[...] = jnp.zeros_like(partial_ref)

    x = x_ref[...].astype(jnp.float32)
    t = t_ref[...].astype(jnp.float32)

    # clip(p, eps, 1-eps) of the reference == sigmoid(clip(x, -xclip, xclip)).
    xc = jnp.clip(x, -xclip, xclip)

    # 3 EUP ops/element: exp, log, rsqrt (general gamma adds 2 exps below).
    h = jnp.exp(-0.5 * xc)            # exp(-x/2)
    s = h * h + 1.0                   # = 1/p
    big_l = jnp.log(s)                # = -log(p)   >= 0
    l_plus_x = big_l + xc             # = -log(1-p) >= 0
    sqrt_p = jax.lax.rsqrt(s)         # = sqrt(p)
    sqrt_q = h * sqrt_p               # = sqrt(1-p)

    if gamma == 0.5:
        pow_q, pow_p = sqrt_q, sqrt_p
    elif gamma == 1.0:
        pow_q, pow_p = sqrt_q * sqrt_q, sqrt_p * sqrt_p
    elif gamma == 2.0:
        q1, p1 = sqrt_q * sqrt_q, sqrt_p * sqrt_p
        pow_q, pow_p = q1 * q1, p1 * p1
    else:
        pow_q = jnp.exp(-gamma * l_plus_x)   # (1-p)^gamma
        pow_p = jnp.exp(-gamma * big_l)      # p^gamma

    # loss = t*alpha*(1-p)^g*(-log p) + (1-t)*(1-alpha)*p^g*(-log(1-p))
    #      = t*(a - b) + b   (leading minus and alpha folded into a, b)
    a = (alpha * pow_q) * big_l
    b = ((1.0 - alpha) * pow_p) * l_plus_x
    loss = t * (a - b) + b

    def _accumulate(v):
        # Free reshape (block_rows,128)->(block_rows/8,8,128); the axis-0 sum is
        # a pure-VPU chain of whole-vreg adds into the resident partial.
        partial_ref[...] += jnp.sum(
            v.reshape(block_rows // SUBLANES, SUBLANES, LANES), axis=0)

    full_tail = (valid_last == block_rows * LANES)
    if full_tail and exact_grid:
        # Every grid step is a distinct, fully valid block: no masking anywhere.
        _accumulate(loss)
    else:
        blk = pl.program_id(0) * inner + i
        last = n_blocks - 1

        @pl.when(blk < last)
        def _interior():               # interior blocks: unmasked accumulate
            _accumulate(loss)

        @pl.when(blk == last)
        def _boundary():               # the single (possibly partial) boundary block
            if full_tail:
                _accumulate(loss)
            else:
                row_ids = jax.lax.broadcasted_iota(jnp.int32, loss.shape, 0)
                col_ids = jax.lax.broadcasted_iota(jnp.int32, loss.shape, 1)
                idx = row_ids * LANES + col_ids   # block-local: fits int32 always
                # Select (not multiply): garbage lanes in the padded tail may be
                # NaN/Inf after the math; where() discards them.
                _accumulate(jnp.where(idx < valid_last, loss, 0.0))
        # blk > last: overhang step from grid rounding; its clamped, re-read
        # block contributes nothing.


def focal_loss(output, target, *, gamma=GAMMA, alpha=ALPHA, eps=EPS,
               block_rows_max=BLOCK_ROWS_MAX):
    """Sigmoid focal loss with mean reduction (weight=None)."""
    assert output.shape == target.shape
    total_n = int(output.size)
    assert total_n > 0

    x_flat = jnp.reshape(output, (-1,))
    t_flat = jnp.reshape(target, (-1,))

    rem = total_n % LANES
    if rem:
        # TODO(synk): a manual-DMA (memory_space=pl.ANY) path could avoid this
        # full-array copy when numel is not a multiple of 128; only the <128
        # element tail actually needs padding.  Aligned sizes take the copy-free
        # path below.
        pad = LANES - rem
        x_flat = jnp.pad(x_flat, (0, pad))
        t_flat = jnp.pad(t_flat, (0, pad))

    rows = x_flat.size // LANES
    x2d = x_flat.reshape(rows, LANES)   # layout-preserving: no HBM rewrite
    t2d = t_flat.reshape(rows, LANES)

    block_rows = min(block_rows_max, _round_up(rows, SUBLANES))
    block_rows = _round_up(block_rows, SUBLANES)
    n_blocks = pl.cdiv(rows, block_rows)
    outer = max(1, min(_num_tensorcores(), n_blocks))
    inner = pl.cdiv(n_blocks, outer)

    valid_last = total_n - (n_blocks - 1) * block_rows * LANES
    exact_grid = (outer * inner == n_blocks)
    last_blk = n_blocks - 1

    kernel = functools.partial(
        _focal_loss_kernel,
        gamma=float(gamma), alpha=float(alpha),
        xclip=float(math.log((1.0 - eps) / eps)),
        inner=int(inner), n_blocks=int(n_blocks),
        block_rows=int(block_rows), valid_last=int(valid_last),
        exact_grid=bool(exact_grid),
    )

    def in_index_map(o, i):
        # Clamp so overhang grid steps (grid rounding) re-read the last real
        # block; the kernel skips their accumulation.
        return (jnp.minimum(o * inner + i, last_blk), 0)

    n_transc = 3 if float(gamma) in (0.5, 1.0, 2.0) else 5
    cost = pl.CostEstimate(
        flops=16 * total_n,
        transcendentals=n_transc * total_n,
        bytes_accessed=int(x2d.size * x2d.dtype.itemsize
                           + t2d.size * t2d.dtype.itemsize
                           + outer * SUBLANES * LANES * 4),
    )

    partials = pl.pallas_call(
        kernel,
        out_shape=jax.ShapeDtypeStruct((outer * SUBLANES, LANES), jnp.float32),
        grid_spec=pltpu.PrefetchScalarGridSpec(
            num_scalar_prefetch=0,
            grid=(outer, inner),
            in_specs=[
                pl.BlockSpec((block_rows, LANES), in_index_map),
                pl.BlockSpec((block_rows, LANES), in_index_map),
            ],
            out_specs=pl.BlockSpec((SUBLANES, LANES), lambda o, i: (o, 0)),
        ),
        compiler_params=pltpu.CompilerParams(
            dimension_semantics=("parallel", "arbitrary")),
        cost_estimate=cost,
    )(x2d, t2d)

    return jnp.sum(partials) / jnp.float32(total_n)


def focal_loss_ref(output, target, *, gamma=GAMMA, alpha=ALPHA, eps=EPS):
    p = jax.nn.sigmoid(output.astype(jnp.float32))
    p = jnp.clip(p, eps, 1.0 - eps)
    t = target.astype(jnp.float32)
    loss = -(t * alpha * (1.0 - p) ** gamma * jnp.log(p)
             + (1.0 - t) * (1.0 - alpha) * p ** gamma * jnp.log(1.0 - p))
    return jnp.mean(loss)


def _check(name, x, t, **kw):
    ref_kw = {k: v for k, v in kw.items() if k != "block_rows_max"}
    got = jax.block_until_ready(focal_loss(x, t, **kw))
    want = focal_loss_ref(x, t, **ref_kw)
    assert jnp.allclose(got, want, rtol=1e-5, atol=1e-6), (name, got, want)


if __name__ == "__main__":
    key = jax.random.PRNGKey(0)
    ks = jax.random.split(key, 8)

    # 1) NCHW logits, 128-aligned size (2*4*16*16 = 2048): copy-free fast path.
    x1 = jax.random.normal(ks[0], (2, 4, 16, 16), dtype=jnp.float32)
    t1 = jax.random.bernoulli(ks[1], 0.3, (2, 4, 16, 16)).astype(jnp.float32)
    _check("aligned", x1, t1)

    # 2) Ragged size (3*5*7*11 = 1155): padded tail + masked boundary block.
    x2 = jax.random.normal(ks[2], (3, 5, 7, 11), dtype=jnp.float32)
    t2 = jax.random.bernoulli(ks[3], 0.3, (3, 5, 7, 11)).astype(jnp.float32)
    _check("ragged", x2, t2)

    # 3) Multi-block grid (small block cap) to exercise interior / boundary /
    #    overhang pl.when branches and the parallel outer axis.
    x3 = jax.random.normal(ks[4], (2, 4, 24, 16), dtype=jnp.float32)
    t3 = jax.random.bernoulli(ks[5], 0.3, (2, 4, 24, 16)).astype(jnp.float32)
    _check("multiblock", x3, t3, block_rows_max=8)

    # 4) Non-default gamma code paths.
    _check("gamma2", x2, t2, gamma=2.0, block_rows_max=8)
    _check("gamma_general", x2, t2, gamma=0.7, alpha=0.4)

    # 5) bf16 logits: HBM traffic stays narrow, kernel widens to f32 internally.
    _check("bf16", x1.astype(jnp.bfloat16), t1)

    print("KERNEL_OK")
</pallas_src>

<mosaic_0001>
module attributes {stable_mosaic.version = 11 : i64} {
  func.func @_focal_loss_kernel(%arg0: i32, %arg1: i32, %arg2: memref<16x128xf32, #tpu.memory_space<vmem>>, %arg3: memref<16x128xf32, #tpu.memory_space<vmem>>, %arg4: memref<8x128xf32, #tpu.memory_space<vmem>>) attributes {dimension_semantics = [#tpu.dimension_semantics<parallel>, #tpu.dimension_semantics<arbitrary>], iteration_bounds = array<i64: 1, 1>, scalar_prefetch = 0 : i64, scratch_operands = 0 : i64, tpu.core_type = #tpu.core_type<tc>, window_params = [{transform_indices = @transform_0, window_bounds = array<i64: 16, 128>}, {transform_indices = @transform_1, window_bounds = array<i64: 16, 128>}, {transform_indices = @transform_2, window_bounds = array<i64: 8, 128>}]} {
    %c0_i32 = arith.constant 0 : i32
    %0 = arith.cmpi eq, %arg1, %c0_i32 : i32
    %1 = arith.extui %0 : i1 to i32
    %c0_i32_0 = arith.constant 0 : i32
    %2 = arith.cmpi ne, %1, %c0_i32_0 : i32
    scf.if %2 {
      %cst_14 = arith.constant 0.000000e+00 : f32
      %33 = vector.broadcast %cst_14 : f32 to vector<8x128xf32>
      %c0_15 = arith.constant 0 : index
      %c0_16 = arith.constant 0 : index
      %34 = vector.load %arg4[%c0_15, %c0_16] : memref<8x128xf32, #tpu.memory_space<vmem>>, vector<8x128xf32>
      tpu.vector_store %arg4[%c0_15, %c0_16], %33 {strides = array<i32>} : memref<8x128xf32, #tpu.memory_space<vmem>>, vector<8x128xf32>,
    } else {
    }
    %c0 = arith.constant 0 : index
    %c0_1 = arith.constant 0 : index
    %3 = vector.load %arg2[%c0, %c0_1] : memref<16x128xf32, #tpu.memory_space<vmem>>, vector<16x128xf32>
    %c0_2 = arith.constant 0 : index
    %c0_3 = arith.constant 0 : index
    %4 = vector.load %arg3[%c0_2, %c0_3] : memref<16x128xf32, #tpu.memory_space<vmem>>, vector<16x128xf32>
    %cst = arith.constant -16.1180954 : f32
    %cst_4 = arith.constant 16.1180954 : f32
    %5 = vector.broadcast %cst : f32 to vector<16x128xf32>
    %6 = arith.maximumf %5, %3 : vector<16x128xf32>
    %7 = vector.broadcast %cst_4 : f32 to vector<16x128xf32>
    %8 = arith.minimumf %7, %6 : vector<16x128xf32>
    %cst_5 = arith.constant -5.000000e-01 : f32
    %9 = vector.broadcast %cst_5 : f32 to vector<16x128xf32>
    %10 = arith.mulf %9, %8 : vector<16x128xf32>
    %11 = math.exp %10 : vector<16x128xf32>
    %12 = arith.mulf %11, %11 : vector<16x128xf32>
    %cst_6 = arith.constant 1.000000e+00 : f32
    %13 = vector.broadcast %cst_6 : f32 to vector<16x128xf32>
    %14 = arith.addf %12, %13 : vector<16x128xf32>
    %15 = math.log %14 : vector<16x128xf32>
    %16 = arith.addf %15, %8 : vector<16x128xf32>
    %17 = math.rsqrt %14 : vector<16x128xf32>
    %18 = arith.mulf %11, %17 : vector<16x128xf32>
    %cst_7 = arith.constant 2.500000e-01 : f32
    %19 = vector.broadcast %cst_7 : f32 to vector<16x128xf32>
    %20 = arith.mulf %19, %18 : vector<16x128xf32>
    %21 = arith.mulf %20, %15 : vector<16x128xf32>
    %cst_8 = arith.constant 7.500000e-01 : f32
    %22 = vector.broadcast %cst_8 : f32 to vector<16x128xf32>
    %23 = arith.mulf %22, %17 : vector<16x128xf32>
    %24 = arith.mulf %23, %16 : vector<16x128xf32>
    %25 = arith.subf %21, %24 : vector<16x128xf32>
    %26 = arith.mulf %4, %25 : vector<16x128xf32>
    %27 = arith.addf %26, %24 : vector<16x128xf32>
    %c0_9 = arith.constant 0 : index
    %c0_10 = arith.constant 0 : index
    %28 = vector.load %arg4[%c0_9, %c0_10] : memref<8x128xf32, #tpu.memory_space<vmem>>, vector<8x128xf32>
    %29 = vector.shape_cast %27 : vector<16x128xf32> to vector<2x8x128xf32>
    %cst_11 = arith.constant dense<0.000000e+00> : vector<8x128xf32>
    %30 = vector.multi_reduction <add>, %29, %cst_11 [0] : vector<2x8x128xf32> to vector<8x128xf32>
    %31 = arith.addf %28, %30 : vector<8x128xf32>
    %c0_12 = arith.constant 0 : index
    %c0_13 = arith.constant 0 : index
    %32 = vector.load %arg4[%c0_12, %c0_13] : memref<8x128xf32, #tpu.memory_space<vmem>>, vector<8x128xf32>
    tpu.vector_store %arg4[%c0_12, %c0_13], %31 {strides = array<i32>} : memref<8x128xf32, #tpu.memory_space<vmem>>, vector<8x128xf32>,
    return
  }
  func.func @transform_0(%arg0: i32, %arg1: i32) -> (i32, i32) {
    %c1_i32 = arith.constant 1 : i32
    %0 = arith.muli %arg0, %c1_i32 : i32
    %1 = arith.addi %0, %arg1 : i32
    %c0_i32 = arith.constant 0 : i32
    %2 = arith.minsi %1, %c0_i32 : i32
    %c0_i32_0 = arith.constant 0 : i32
    %c0_i32_1 = arith.constant 0 : i32
    return %2, %c0_i32_0 : i32, i32
  }
  func.func @transform_1(%arg0: i32, %arg1: i32) -> (i32, i32) {
    %c1_i32 = arith.constant 1 : i32
    %0 = arith.muli %arg0, %c1_i32 : i32
    %1 = arith.addi %0, %arg1 : i32
    %c0_i32 = arith.constant 0 : i32
    %2 = arith.minsi %1, %c0_i32 : i32
    %c0_i32_0 = arith.constant 0 : i32
    %c0_i32_1 = arith.constant 0 : i32
    return %2, %c0_i32_0 : i32, i32
  }
  func.func @transform_2(%arg0: i32, %arg1: i32) -> (i32, i32) {
    %c0_i32 = arith.constant 0 : i32
    %c0_i32_0 = arith.constant 0 : i32
    return %arg0, %c0_i32 : i32, i32
  }
}

</mosaic_0001>

<bundles_post_ra>
// kernel: tpu_custom_call.1
= control target key start
LH: loop header
LB: loop body
LE: loop exit
PB: predicated region body
PF: predicated region fallthrough
CT: control target
= control target key end

     0   :  { %7 = vsyncpa [#allocation3], 0  ;;  %s246_s0 = inlined_call_operand.hbm [shape: f32[16,128], index: 0, kind: input, shape index: {}]   ;;  %s247_s1 = inlined_call_operand.hbm [shape: f32[16,128], index: 1, kind: input, shape index: {}]   ;;  %s248_s2 = inlined_call_operand.hbm [shape: f32[8,128], index: 2, kind: output, shape index: {}]  }
   0x1   :  { %8 = vsyncpa [#allocation6], 0 }
   0x2   :  { %9 = vsyncpa [#allocation4], 0  ;;  %s217_s9 = smov [#allocation2]  }
   0x3   :  { %s21_s10 = sshll.u32 %s217_s9, 4  ;;  %s22_s10 = int_to_ptr.vmem [resolvable:$true] %s21_s10 }
   0x4   :  { %s159_s11 = scalar_lea.vmem %s22_s10, 256  ;;  %p164_p1 = scmp.lt.s32.totalorder %s22_s10, %s22_s10 }
   0x5   :  { %p160_p0 = scmp.ne.s32.totalorder %s22_s10, %s159_s11  ;;  %p165_p2 = scmp.lt.s32.totalorder %s159_s11, %s159_s11 }
   0x7   :  { %p166_p3 = por %p165_p2, %p164_p1 }
   0x9   :  { %p167_p4 = pnand %p166_p3, %p160_p0 }
   0xb   :  { %170 = shalt.err (!%p167_p4)
}
   0xc   :  { %s218_s12 = smov 128   ;;  %s219_s13 = smov 8  }
   0xd   :  { %27 = dma.hbm_to_vmem [thread:$0]  %s246_s0, 256, %s22_s10, [#allocation3], %s218_s12, %s218_s12, %s219_s13  }
   0xe   :  { %s220_s16 = smov [#allocation5]  }
   0xf   :  { %s39_s17 = sshll.u32 %s220_s16, 4  ;;  %s40_s17 = int_to_ptr.vmem [resolvable:$true] %s39_s17 }
  0x10   :  { %s179_s18 = scalar_lea.vmem %s40_s17, 256  ;;  %p184_p6 = scmp.lt.s32.totalorder %s40_s17, %s40_s17 }
  0x11   :  { %p180_p5 = scmp.ne.s32.totalorder %s40_s17, %s179_s18  ;;  %p185_p7 = scmp.lt.s32.totalorder %s179_s18, %s179_s18 }
  0x13   :  { %p186_p8 = por %p185_p7, %p184_p6 }
  0x15   :  { %p187_p9 = pnand %p186_p8, %p180_p5 }
  0x17   :  { %190 = shalt.err (!%p187_p9)
}
  0x18   :  { %45 = dma.hbm_to_vmem [thread:$0]  %s247_s1, 256, %s40_s17, [#allocation6], %s218_s12, %s218_s12, %s219_s13  }
  0x19   :  { %211 = dma.done.wait [#allocation3], 256  }
  0x1a   :  { %212 = vsyncadd [#allocation3], 4294967040 }
  0x1b   :  { %213 = dma.done.wait [#allocation6], 256  }
  0x1c   :  { %214 = vsyncadd [#allocation6], 4294967040  ;;  %v65_v0 = vld [vmem:[#allocation2] sm:$0xff]  ;;  %v66_v1 = vld [vmem:[#allocation2 + $0x8] sm:$0xff]  ;;  %s221_s0 = smov [#allocation7]  }
  0x1d   :  { %v131_v2 = vclamps-f32 %v65_v0, 16.118095  ;;  %v132_v3 = vclamps-f32 %v66_v1, 16.118095  ;;  %v67_v31 = vld [vmem:[#allocation5] sm:$0xff]  ;;  %v68_v33 = vld [vmem:[#allocation5 + $0x8] sm:$0xff] }
  0x1e   :  { %s117_s1 = sshll.u32 %s221_s0, 4  ;;  %s118_s1 = int_to_ptr.vmem [resolvable:$true] %s117_s1 }
  0x1f   :  { %v73_v4 = vmul.f32 -0.5, %v131_v2  ;;  %v74_v5 = vmul.f32 -0.5, %v132_v3  ;;  %s191_s21 = scalar_lea.vmem %s118_s1, 128  ;;  %p196_p11 = scmp.lt.s32.totalorder %s118_s1, %s118_s1 }
  0x20   :  { %p192_p10 = scmp.ne.s32.totalorder %s118_s1, %s191_s21  ;;  %p197_p12 = scmp.lt.s32.totalorder %s191_s21, %s191_s21 }
  0x21   :  { %v75_v6 = vmul.f32 1.442695, %v73_v4  ;;  %v77_v7 = vmul.f32 1.442695, %v74_v5 }
  0x22   :  { %p198_p13 = por %p197_p12, %p196_p11 }
  0x23   :  { %139 = vpow2.f32 %v75_v6 }
  0x24   :  { %141 = vpow2.f32 %v77_v7  ;;  %p199_p0 = pnand %p198_p13, %p192_p10 }
  0x30   :  { %v140_v8 = vpop.eup %139 }
  0x31   :  { %v142_v9 = vpop.eup %141  ;;  %v79_v10 = vmul.f32 %v140_v8, %v140_v8 }
  0x32   :  { %v80_v11 = vmul.f32 %v142_v9, %v142_v9 }
  0x33   :  { %v81_v12 = vadd.f32 1.0, %v79_v10 }
  0x34   :  { %v82_v13 = vadd.f32 1.0, %v80_v11 }
  0x35   :  { %143 = vlog2.f32 %v81_v12 }
  0x36   :  { %145 = vlog2.f32 %v82_v13 }
  0x37   :  { %147 = vrsqrt.f32 %v81_v12 }
  0x38   :  { %149 = vrsqrt.f32 %v82_v13 }
  0x42   :  { %v144_v14 = vpop.eup %143 }
  0x43   :  { %v146_v15 = vpop.eup %145  ;;  %v84_v16 = vmul.f32 0.6931472, %v144_v14 }
  0x44   :  { %v148_v17 = vpop.eup %147  ;;  %v86_v18 = vmul.f32 0.6931472, %v146_v15 }
  0x45   :  { %v150_v19 = vpop.eup %149  ;;  %v87_v20 = vadd.f32 %v131_v2, %v84_v16  ;;  %v91_v21 = vmul.f32 %v148_v17, %v140_v8  ;;  %v97_v22 = vmul.f32 0.75, %v148_v17 }
  0x46   :  { %v88_v23 = vadd.f32 %v132_v3, %v86_v18  ;;  %v92_v24 = vmul.f32 %v150_v19, %v142_v9  ;;  %v98_v25 = vmul.f32 0.75, %v150_v19 }
  0x47   :  { %v93_v26 = vmul.f32 0.25, %v91_v21  ;;  %v99_v27 = vmul.f32 %v97_v22, %v87_v20 }
  0x48   :  { %v94_v28 = vmul.f32 0.25, %v92_v24  ;;  %v100_v29 = vmul.f32 %v98_v25, %v88_v23 }
  0x49   :  { %v95_v30 = vmul.f32 %v93_v26, %v84_v16 }
  0x4a   :  { %v96_v32 = vmul.f32 %v94_v28, %v86_v18 }
  0x4b   :  { %v101_v34 = vsub.f32 %v95_v30, %v99_v27 }
  0x4c   :  { %v102_v35 = vsub.f32 %v96_v32, %v100_v29 }
  0x4d   :  { %v103_v36 = vmul.f32 %v101_v34, %v67_v31 }
  0x4e   :  { %v104_v37 = vmul.f32 %v102_v35, %v68_v33 }
  0x4f   :  { %v105_v38 = vadd.f32 %v103_v36, %v99_v27 }
  0x50   :  { %v106_v39 = vadd.f32 %v104_v37, %v100_v29 }
  0x52   :  { %v108_v40 = vadd.f32 %v106_v39, %v105_v38 }
  0x54   :  { %110 = vst [vmem:[#allocation7] sm:$0xff] %v108_v40 }
  0x55   :  { %202 = shalt.err (!%p199_p0)
}
  0x56   :  { %120 = dma.vmem_to_hbm [thread:$0]  %s118_s1, 128, %s248_s2, [#allocation4]  }
  0x57   :  { %215 = dma.done.wait [#allocation4], 128  }
  0x58   :  { %216 = vsyncadd [#allocation4], 4294967168 }
  0x59   :  { %124 = vsyncpa [#allocation3], 1 }
  0x5a   :  { %125 = vsyncpa [#allocation6], 1 }
  0x5b   :  { %126 = vsyncpa [#allocation4], 1 }

</bundles_post_ra>
